<compile_context>
chip_gen: v7x
topology: tpu7x:2x2x1
jax: 0.10.0
libtpu: 0.0.40
codegen_flags: <defaults>
</compile_context>

<pallas_src>
import functools
import math

import jax
import jax.numpy as jnp
from jax.experimental import pallas as pl
from jax.experimental.pallas import tpu as pltpu


# ----------------------------------------------------------------------------
# Parameter / buffer construction (deterministic, mirrors nn.Module.__init__)
# ----------------------------------------------------------------------------
def make_pe_table(max_len: int, d_model: int, dtype=jnp.float32) -> jnp.ndarray:
    """pe[pos, 2i]   = sin(pos * exp(2i * -ln(10000)/d_model))
       pe[pos, 2i+1] = cos(pos * exp(2i * -ln(10000)/d_model))"""
    position = jnp.arange(max_len, dtype=jnp.float32)[:, None]              # (L, 1)
    div_term = jnp.exp(
        jnp.arange(0, d_model, 2, dtype=jnp.float32) * (-math.log(10000.0) / d_model)
    )                                                                        # (D/2,)
    angles = position * div_term                                             # (L, D/2)
    pe = jnp.zeros((max_len, d_model), dtype=jnp.float32)
    pe = pe.at[:, 0::2].set(jnp.sin(angles))
    pe = pe.at[:, 1::2].set(jnp.cos(angles))
    return pe.astype(dtype)


# ----------------------------------------------------------------------------
# Kernels.  The pe block has one fewer leading dim than the x block in the
# single-step path; jnp broadcasting handles both layouts with one kernel.
# ----------------------------------------------------------------------------
def _pe_add_kernel(x_ref, pe_ref, o_ref):
    o_ref[...] = x_ref[...] + pe_ref[...]


def _pe_add_dropout_kernel(seed_ref, x_ref, pe_ref, o_ref, *, rate):
    keep = 1.0 - rate
    # Decorrelate the PRNG stream across grid steps; mix with a large odd
    # constant so neighbouring tiles don't get adjacent seeds (int32 wraps).
    flat_step = pl.program_id(0) * pl.num_programs(1) + pl.program_id(1)
    pltpu.prng_seed(seed_ref[0] + flat_step * jnp.int32(668265261))
    y = x_ref[...] + pe_ref[...]
    # Integer-threshold Bernoulli: bits uniform over all 32-bit patterns;
    # interpret as signed int32 and keep iff bits < keep*2^32 - 2^31.
    bits = pltpu.bitcast(pltpu.prng_random_bits(y.shape), jnp.int32)
    thresh = int(round(keep * 4294967296.0)) - 2147483648
    thresh = max(-(2 ** 31), min(2 ** 31 - 1, thresh))
    scale = jnp.asarray(1.0 / keep, dtype=y.dtype)
    o_ref[...] = jnp.where(bits < jnp.int32(thresh), y * scale, jnp.zeros_like(y))


# ----------------------------------------------------------------------------
# Tiling helpers
# ----------------------------------------------------------------------------
def _sublane_align(itemsize: int) -> int:
    """Native second-minor tile size for the dtype (sublane packing)."""
    if itemsize >= 4:
        return 8
    if itemsize == 2:
        return 16
    return 32


def _pick_row_tile(rows: int, row_bytes: int, align: int,
                   target_bytes: int = 4 << 20) -> int:
    """Sublane-aligned row tile <= target_bytes.  Prefers a divisor of `rows`;
    otherwise the caller uses a cdiv grid (Pallas masks the ragged tail block).
    Never returns an oversized full-extent block."""
    if rows <= align or rows * row_bytes <= target_bytes:
        return rows                       # single full-extent row tile (fits budget)
    budget = max(align, (target_bytes // max(row_bytes, 1)) // align * align)
    t = min(budget, (rows // align) * align)
    tt = t
    while tt >= align:
        if rows % tt == 0:
            return tt                     # aligned divisor: no ragged tail
        tt -= align
    return t                              # aligned tile + masked tail block


# ----------------------------------------------------------------------------
# Wrapper
# ----------------------------------------------------------------------------
def positional_encoding(x, pe_table, *, dropout_rate=0.1, training=False, seed=0):
    """x: [B, S, D]; pe_table: [max_len, D]. Returns dropout(x + pe[:S])."""
    B, S, D = x.shape
    pe_s = pe_table[:S].astype(x.dtype)   # pre-cast + static slice outside kernel

    # ---- lane-dense layout ---------------------------------------------------
    if D % 128 == 0:
        rows, lanes = S, D
        x_r, pe_r = x, pe_s
        orig_flat = None
    else:
        # Flatten (S, D) and pad the flat axis up to a multiple of 128 lanes so
        # every store is a full-width vst; slice the padding off afterwards.
        flat = S * D
        pad = (-flat) % 128
        lanes = 128
        rows = (flat + pad) // 128
        x_flat = x.reshape(B, flat)
        pe_flat = pe_s.reshape(flat)
        if pad:
            x_flat = jnp.pad(x_flat, ((0, 0), (0, pad)))
            pe_flat = jnp.pad(pe_flat, ((0, pad),))
        x_r = x_flat.reshape(B, rows, lanes)
        pe_r = pe_flat.reshape(rows, lanes)
        orig_flat = flat

    itemsize = jnp.dtype(x.dtype).itemsize
    align = _sublane_align(itemsize)
    row_bytes = lanes * itemsize
    total_bytes = B * rows * row_bytes

    # ---- grid / block selection ----------------------------------------------
    single_step = total_bytes <= (1 << 20)      # tiny input: one grid step
    if single_step:
        grid = (1, 1)
        x_spec = pl.BlockSpec((B, rows, lanes), lambda s, b: (0, 0, 0))
        pe_spec = pl.BlockSpec((rows, lanes), lambda s, b: (0, 0))
        out_spec = pl.BlockSpec((B, rows, lanes), lambda s, b: (0, 0, 0))
        tile_bytes = total_bytes
    else:
        tr = _pick_row_tile(rows, row_bytes, align)
        n_tiles = pl.cdiv(rows, tr)
        # v7x has 2 TensorCores: make sure a B==1 call still has >= 2 steps.
        if B == 1 and n_tiles == 1 and rows >= 2 * align:
            half = (rows + 1) // 2
            tr = ((half + align - 1) // align) * align
            n_tiles = pl.cdiv(rows, tr)
        # Batch is the fastest-varying grid axis: the pe block index is
        # unchanged between consecutive steps, so its DMA is skipped and pe is
        # fetched n_tiles times instead of B * n_tiles times.
        grid = (n_tiles, B)
        x_spec = pl.BlockSpec((None, tr, lanes), lambda s, b: (b, s, 0))
        pe_spec = pl.BlockSpec((tr, lanes), lambda s, b: (s, 0))
        out_spec = pl.BlockSpec((None, tr, lanes), lambda s, b: (b, s, 0))
        tile_bytes = tr * row_bytes

    out_shape = jax.ShapeDtypeStruct((B, rows, lanes), x.dtype)
    # x + pe + out double-buffered, plus headroom for PRNG / where temporaries;
    # capped well below v7x's 64 MiB physical VMEM.
    vmem_limit = int(min(max(8 * tile_bytes, 16 << 20), 48 << 20))
    cparams = pltpu.CompilerParams(
        dimension_semantics=("parallel", "parallel"),
        vmem_limit_bytes=vmem_limit,
    )

    if (not training) or dropout_rate == 0.0:
        # Eval-mode dropout == identity (matches nn.Dropout in eval()).
        out = pl.pallas_call(
            _pe_add_kernel,
            out_shape=out_shape,
            grid=grid,
            in_specs=[x_spec, pe_spec],
            out_specs=out_spec,
            compiler_params=cparams,
        )(x_r, pe_r)
    elif dropout_rate >= 1.0:
        # p == 1 drops everything; avoid the 1/keep = inf scale entirely.
        out = jnp.zeros((B, rows, lanes), x.dtype)
    else:
        # Training-mode inverted dropout with the on-chip PRNG.
        # TODO(synk): torch's dropout RNG stream cannot be reproduced bit-exactly.
        seed_arr = jnp.array([seed], dtype=jnp.int32)
        out = pl.pallas_call(
            functools.partial(_pe_add_dropout_kernel, rate=float(dropout_rate)),
            out_shape=out_shape,
            grid=grid,
            in_specs=[
                pl.BlockSpec(memory_space=pltpu.MemorySpace.SMEM),
                x_spec,
                pe_spec,
            ],
            out_specs=out_spec,
            compiler_params=cparams,
        )(seed_arr, x_r, pe_r)

    if orig_flat is not None:
        out = out.reshape(B, rows * lanes)[:, :orig_flat].reshape(B, S, D)
    return out


# ----------------------------------------------------------------------------
# Main
# ----------------------------------------------------------------------------
if __name__ == "__main__":
    # Shapes consistent with the module's forward: [batch, seq, d_model]
    B, S, D = 2, 8, 32
    MAX_LEN = 100
    DROPOUT = 0.1

    key = jax.random.PRNGKey(0)
    x = jax.random.normal(key, (B, S, D), dtype=jnp.float32)
    pe = make_pe_table(MAX_LEN, D)

    # Eval-mode forward (dropout = identity): deterministic reference check.
    out = positional_encoding(x, pe, dropout_rate=DROPOUT, training=False)
    out = jax.block_until_ready(out)
    ref = x + pe[:S][None, :, :]
    assert out.shape == (B, S, D), out.shape
    assert out.dtype == x.dtype, out.dtype
    assert jnp.allclose(out, ref, atol=1e-6, rtol=1e-6), "mismatch vs reference"

    # Ragged d_model (S*D not a multiple of 128) -> exercises the lane-padding path.
    S2, D2 = 7, 20
    x2 = jax.random.normal(jax.random.PRNGKey(1), (B, S2, D2), dtype=jnp.float32)
    pe2 = make_pe_table(MAX_LEN, D2)
    out2 = positional_encoding(x2, pe2, dropout_rate=DROPOUT, training=False)
    out2 = jax.block_until_ready(out2)
    ref2 = x2 + pe2[:S2][None, :, :]
    assert out2.shape == (B, S2, D2), out2.shape
    assert jnp.allclose(out2, ref2, atol=1e-6, rtol=1e-6), "mismatch vs reference (ragged D)"

    print("KERNEL_OK")
</pallas_src>

<mosaic_0001>
module attributes {stable_mosaic.version = 11 : i64} {
  func.func @_pe_add_kernel(%arg0: i32, %arg1: i32, %arg2: memref<2x2x128xf32, #tpu.memory_space<vmem>>, %arg3: memref<2x128xf32, #tpu.memory_space<vmem>>, %arg4: memref<2x2x128xf32, #tpu.memory_space<vmem>>) attributes {dimension_semantics = [#tpu.dimension_semantics<parallel>, #tpu.dimension_semantics<parallel>], iteration_bounds = array<i64: 1, 1>, scalar_prefetch = 0 : i64, scratch_operands = 0 : i64, tpu.core_type = #tpu.core_type<tc>, window_params = [{pipeline_mode = #tpu.pipeline_mode<synchronous>, transform_indices = @transform_0, window_bounds = array<i64: 2, 2, 128>}, {pipeline_mode = #tpu.pipeline_mode<synchronous>, transform_indices = @transform_1, window_bounds = array<i64: 2, 128>}, {pipeline_mode = #tpu.pipeline_mode<synchronous>, transform_indices = @transform_2, window_bounds = array<i64: 2, 2, 128>}]} {
    %c0 = arith.constant 0 : index
    %c0_0 = arith.constant 0 : index
    %c0_1 = arith.constant 0 : index
    %0 = vector.load %arg2[%c0, %c0_0, %c0_1] : memref<2x2x128xf32, #tpu.memory_space<vmem>>, vector<2x2x128xf32>
    %c0_2 = arith.constant 0 : index
    %c0_3 = arith.constant 0 : index
    %1 = vector.load %arg3[%c0_2, %c0_3] : memref<2x128xf32, #tpu.memory_space<vmem>>, vector<2x128xf32>
    %2 = vector.shape_cast %1 : vector<2x128xf32> to vector<1x2x128xf32>
    %3 = vector.broadcast %2 : vector<1x2x128xf32> to vector<2x2x128xf32>
    %4 = arith.addf %0, %3 : vector<2x2x128xf32>
    %c0_4 = arith.constant 0 : index
    %c0_5 = arith.constant 0 : index
    %c0_6 = arith.constant 0 : index
    %5 = vector.load %arg4[%c0_4, %c0_5, %c0_6] : memref<2x2x128xf32, #tpu.memory_space<vmem>>, vector<2x2x128xf32>
    tpu.vector_store %arg4[%c0_4, %c0_5, %c0_6], %4 {strides = array<i32>} : memref<2x2x128xf32, #tpu.memory_space<vmem>>, vector<2x2x128xf32>,
    return
  }
  func.func @transform_0(%arg0: i32, %arg1: i32) -> (i32, i32, i32) {
    %c0_i32 = arith.constant 0 : i32
    %c0_i32_0 = arith.constant 0 : i32
    %c0_i32_1 = arith.constant 0 : i32
    %c0_i32_2 = arith.constant 0 : i32
    return %c0_i32, %c0_i32_0, %c0_i32_1 : i32, i32, i32
  }
  func.func @transform_1(%arg0: i32, %arg1: i32) -> (i32, i32) {
    %c0_i32 = arith.constant 0 : i32
    %c0_i32_0 = arith.constant 0 : i32
    %c0_i32_1 = arith.constant 0 : i32
    return %c0_i32, %c0_i32_0 : i32, i32
  }
  func.func @transform_2(%arg0: i32, %arg1: i32) -> (i32, i32, i32) {
    %c0_i32 = arith.constant 0 : i32
    %c0_i32_0 = arith.constant 0 : i32
    %c0_i32_1 = arith.constant 0 : i32
    %c0_i32_2 = arith.constant 0 : i32
    return %c0_i32, %c0_i32_0, %c0_i32_1 : i32, i32, i32
  }
}

</mosaic_0001>

<bundles_post_ra>
// kernel: tpu_custom_call.1
= control target key start
LH: loop header
LB: loop body
LE: loop exit
PB: predicated region body
PF: predicated region fallthrough
CT: control target
= control target key end

     0   :  { %7 = vsyncpa [#allocation3], 0  ;;  %s154_s0 = inlined_call_operand.hbm [shape: f32[2,2,128], index: 0, kind: input, shape index: {}]   ;;  %s155_s1 = inlined_call_operand.vmem [shape: f32[2,128], index: 1, kind: input, shape index: {}]   ;;  %s156_s2 = inlined_call_operand.hbm [shape: f32[2,2,128], index: 2, kind: output, shape index: {}]  }
   0x1   :  { %8 = vsyncpa [#allocation4], 0  ;;  %s102_s9 = smov [#allocation2]   ;;  %s54_s13 = scalar_lea.hbm %s154_s0, 64 }
   0x2   :  { %s14_s10 = sshll.u32 %s102_s9, 4  ;;  %p55_p0 = scmp.ne.s32.totalorder %s154_s0, %s54_s13  ;;  %s15_s10 = int_to_ptr.vmem [resolvable:$true] %s14_s10 }
   0x3   :  { %p58_p1 = scmp.lt.u32.totalorder %s54_s13, %s154_s0 }
   0x5   :  { %p60_p2 = pnand %p58_p1, %p55_p0 }
   0x7   :  { %63 = shalt.err (!%p60_p2)
}
   0x8   :  { %s64_s18 = scalar_lea.vmem %s15_s10, 64  ;;  %p69_p4 = scmp.lt.s32.totalorder %s15_s10, %s15_s10 }
   0x9   :  { %p65_p3 = scmp.ne.s32.totalorder %s15_s10, %s64_s18  ;;  %p70_p5 = scmp.lt.s32.totalorder %s64_s18, %s64_s18 }
   0xb   :  { %p71_p6 = por %p70_p5, %p69_p4 }
   0xd   :  { %p72_p7 = pnand %p71_p6, %p65_p3 }
   0xf   :  { %75 = shalt.err (!%p72_p7)
}
  0x10   :  { %s103_s19 = smov 32   ;;  %s104_s20 = smov 2  }
  0x11   :  { %20 = dma.hbm_to_vmem [thread:$0]  %s154_s0, 64, %s15_s10, [#allocation3], %s103_s19, %s103_s19, %s104_s20  }
  0x12   :  { %98 = dma.done.wait [#allocation3], 64  }
  0x13   :  { %99 = vsyncadd [#allocation3], 4294967232  ;;  %s105_s23 = smov [#allocation5]   ;;  %v26_v0 = vld [vmem:[#allocation2] sm:$0x3] }
  0x14   :  { %s38_s24 = sshll.u32 %s105_s23, 4  ;;  %v28_v1 = vld [vmem:[%s155_s1] sm:$0x3]  ;;  %v27_v2 = vld [vmem:[#allocation2 + $0x2] sm:$0x3]  ;;  %s39_s24 = int_to_ptr.vmem [resolvable:$true] %s38_s24 }
  0x15   :  { %v29_v3 = vadd.f32 %v28_v1, %v26_v0  ;;  %v30_v4 = vadd.f32 %v28_v1, %v27_v2  ;;  %s76_s27 = scalar_lea.vmem %s39_s24, 64  ;;  %p81_p9 = scmp.lt.s32.totalorder %s39_s24, %s39_s24 }
  0x16   :  { %p77_p8 = scmp.ne.s32.totalorder %s39_s24, %s76_s27  ;;  %p82_p10 = scmp.lt.s32.totalorder %s76_s27, %s76_s27 }
  0x17   :  { %31 = vst [vmem:[#allocation5] sm:$0x3] %v29_v3  ;;  %32 = vst [vmem:[#allocation5 + $0x2] sm:$0x3] %v30_v4 }
  0x18   :  { %p83_p11 = por %p82_p10, %p81_p9 }
  0x1a   :  { %p84_p12 = pnand %p83_p11, %p77_p8 }
  0x1c   :  { %87 = shalt.err (!%p84_p12)
}
  0x1d   :  { %s88_s29 = scalar_lea.hbm %s156_s2, 64 }
  0x1e   :  { %p89_p13 = scmp.ne.s32.totalorder %s156_s2, %s88_s29  ;;  %p92_p0 = scmp.lt.u32.totalorder %s88_s29, %s156_s2 }
  0x20   :  { %p94_p1 = pnand %p92_p0, %p89_p13 }
  0x22   :  { %97 = shalt.err (!%p94_p1)
}
  0x23   :  { %44 = dma.vmem_to_hbm [thread:$0]  %s39_s24, 64, %s156_s2, [#allocation4], %s103_s19, %s103_s19, %s104_s20  }
  0x24   :  { %100 = dma.done.wait [#allocation4], 64  }
  0x25   :  { %101 = vsyncadd [#allocation4], 4294967232 }
  0x26   :  { %48 = vsyncpa [#allocation3], 1 }
  0x27   :  { %49 = vsyncpa [#allocation4], 1 }

</bundles_post_ra>
